<compile_context>
chip_gen: v7x
topology: tpu7x:2x2x1
jax: 0.10.0
libtpu: 0.0.40
codegen_flags: <defaults>
</compile_context>

<pallas_src>
import jax
import jax.numpy as jnp
from jax.experimental import pallas as pl
from jax.experimental.pallas import tpu as pltpu

D = 768           # per-modality embedding dim (fixed by the module: 2*768 -> 2)
DEFAULT_TB = 512  # batch tile; ~9 MiB double-buffered streamed working set


def gated_fusion_kernel(e1_ref, e2_ref, dw_ref, db_ref, out_ref):
    # e1_ref, e2_ref : (TB, D)    VMEM, streamed
    # dw_ref         : (1, 2*D)   VMEM, resident  (W[0] - W[1] of the gate Linear)
    # db_ref         : (1,)       SMEM scalar     (b[0] - b[1])
    # out_ref        : (TB, D)    VMEM, streamed
    e1 = e1_ref[...].astype(jnp.float32)
    e2 = e2_ref[...].astype(jnp.float32)

    dw1 = dw_ref[:, 0:D]          # (1, D)   lane-dense
    dw2 = dw_ref[:, D:2 * D]      # (1, D)

    # d = logit0 - logit1 = [e1, e2] @ (W[0] - W[1]) + (b[0] - b[1])
    d = (jnp.sum(e1 * dw1, axis=-1, keepdims=True)
         + jnp.sum(e2 * dw2, axis=-1, keepdims=True)
         + db_ref[0])                                      # (TB, 1)

    # softmax over two classes == sigmoid of the logit difference.
    # Stable for both tails: exp(-d) underflows -> a1 = 1; overflows -> a1 = 0.
    a1 = pl.reciprocal(1.0 + jnp.exp(-d), approx=False)    # (TB, 1)

    # out = a1 * e1 + (1 - a1) * e2
    out_ref[...] = (e2 + a1 * (e1 - e2)).astype(out_ref.dtype)


def gated_fusion(e1, e2, weight, bias, *, tb=DEFAULT_TB):
    """One gate of Gated_Fusion.

    e1, e2 : (B, 768) embeddings
    weight : (2, 2*768)  -- PyTorch nn.Linear weight layout
    bias   : (2,)
    returns: (B, 768)
    """
    B, d = e1.shape
    assert d == D and e2.shape == (B, D)
    assert weight.shape == (2, 2 * D) and bias.shape == (2,)

    # Re-parameterize once (wrapper-side): softmax_2 == sigmoid(logit diff).
    w32 = weight.astype(jnp.float32)
    b32 = bias.astype(jnp.float32)
    dw = (w32[0] - w32[1]).reshape(1, 2 * D)   # (1, 1536), lane-dense
    db = (b32[0] - b32[1]).reshape(1)          # (1,) scalar -> SMEM

    # Don't over-tile tiny batches; keep the sublane-aligned minimum of 8 rows.
    tb = int(min(tb, max(8, ((B + 7) // 8) * 8)))
    grid = (pl.cdiv(B, tb),)

    return pl.pallas_call(
        gated_fusion_kernel,
        out_shape=jax.ShapeDtypeStruct((B, D), e1.dtype),
        grid_spec=pltpu.PrefetchScalarGridSpec(
            num_scalar_prefetch=0,
            grid=grid,
            in_specs=[
                pl.BlockSpec((tb, D), lambda i: (i, 0)),            # e1 tile
                pl.BlockSpec((tb, D), lambda i: (i, 0)),            # e2 tile
                pl.BlockSpec((1, 2 * D), lambda i: (0, 0)),         # dw (resident)
                pl.BlockSpec(memory_space=pltpu.MemorySpace.SMEM),  # db scalar
            ],
            out_specs=pl.BlockSpec((tb, D), lambda i: (i, 0)),
        ),
        compiler_params=pltpu.CompilerParams(
            dimension_semantics=("parallel",)),
    )(e1, e2, dw, db)


def gated_fusion_ref(e1, e2, weight, bias):
    """Literal PyTorch math: concat -> Linear -> softmax -> weighted sum."""
    cat = jnp.concatenate([e1, e2], axis=1).astype(jnp.float32)
    logits = cat @ weight.astype(jnp.float32).T + bias.astype(jnp.float32)
    w = jax.nn.softmax(logits, axis=-1)
    return (w[:, 0:1] * e1.astype(jnp.float32)
            + w[:, 1:2] * e2.astype(jnp.float32)).astype(e1.dtype)


if __name__ == "__main__":
    key = jax.random.PRNGKey(0)
    k1, k2, k3, k4 = jax.random.split(key, 4)

    B = 8  # small demo batch; D=768 is fixed by the module
    e1 = jax.random.normal(k1, (B, D), dtype=jnp.float32)
    e2 = jax.random.normal(k2, (B, D), dtype=jnp.float32)

    # Parameters of one gate (e.g. 'vt'): Linear(2*768 -> 2), PyTorch layout.
    # Modes 'tl' / 'vl' simply pass different (weight, bias) tensors to the
    # same kernel; the mode branch is pure Python glue.
    weight = 0.02 * jax.random.normal(k3, (2, 2 * D), dtype=jnp.float32)
    bias = 0.01 * jax.random.normal(k4, (2,), dtype=jnp.float32)

    out = gated_fusion(e1, e2, weight, bias)
    out = jax.block_until_ready(out)

    ref = gated_fusion_ref(e1, e2, weight, bias)
    assert out.shape == (B, D)
    assert jnp.allclose(out, ref, atol=1e-5, rtol=1e-5), "mismatch vs reference"

    print("KERNEL_OK")
</pallas_src>

<mosaic_0001>
module attributes {stable_mosaic.version = 11 : i64} {
  func.func @gated_fusion_kernel(%arg0: i32, %arg1: memref<8x768xf32, #tpu.memory_space<vmem>>, %arg2: memref<8x768xf32, #tpu.memory_space<vmem>>, %arg3: memref<1x1536xf32, #tpu.memory_space<vmem>>, %arg4: memref<1xf32, #tpu.memory_space<smem>>, %arg5: memref<8x768xf32, #tpu.memory_space<vmem>>) attributes {dimension_semantics = [#tpu.dimension_semantics<parallel>], iteration_bounds = array<i64: 1>, scalar_prefetch = 0 : i64, scratch_operands = 0 : i64, tpu.core_type = #tpu.core_type<tc>, window_params = [{transform_indices = @transform_0, window_bounds = array<i64: 8, 768>}, {transform_indices = @transform_1, window_bounds = array<i64: 8, 768>}, {pipeline_mode = #tpu.pipeline_mode<synchronous>, transform_indices = @transform_2, window_bounds = array<i64: 1, 1536>}, {transform_indices = @transform_3, window_bounds = array<i64: 1>}, {transform_indices = @transform_4, window_bounds = array<i64: 8, 768>}]} {
    %c0 = arith.constant 0 : index
    %c0_0 = arith.constant 0 : index
    %0 = vector.load %arg1[%c0, %c0_0] : memref<8x768xf32, #tpu.memory_space<vmem>>, vector<8x768xf32>
    %c0_1 = arith.constant 0 : index
    %c0_2 = arith.constant 0 : index
    %1 = vector.load %arg2[%c0_1, %c0_2] : memref<8x768xf32, #tpu.memory_space<vmem>>, vector<8x768xf32>
    %c0_3 = arith.constant 0 : index
    %c0_4 = arith.constant 0 : index
    %2 = vector.load %arg3[%c0_3, %c0_4] : memref<1x1536xf32, #tpu.memory_space<vmem>>, vector<1x768xf32>
    %c0_5 = arith.constant 0 : index
    %c768 = arith.constant 768 : index
    %3 = vector.load %arg3[%c0_5, %c768] : memref<1x1536xf32, #tpu.memory_space<vmem>>, vector<1x768xf32>
    %4 = vector.broadcast %2 : vector<1x768xf32> to vector<8x768xf32>
    %5 = arith.mulf %0, %4 : vector<8x768xf32>
    %cst = arith.constant dense<0.000000e+00> : vector<8xf32>
    %6 = vector.multi_reduction <add>, %5, %cst [1] : vector<8x768xf32> to vector<8xf32>
    %7 = vector.shape_cast %6 : vector<8xf32> to vector<8x1xf32>
    %8 = vector.broadcast %3 : vector<1x768xf32> to vector<8x768xf32>
    %9 = arith.mulf %1, %8 : vector<8x768xf32>
    %cst_6 = arith.constant dense<0.000000e+00> : vector<8xf32>
    %10 = vector.multi_reduction <add>, %9, %cst_6 [1] : vector<8x768xf32> to vector<8xf32>
    %11 = vector.shape_cast %10 : vector<8xf32> to vector<8x1xf32>
    %12 = arith.addf %7, %11 : vector<8x1xf32>
    %c0_7 = arith.constant 0 : index
    %13 = memref.load %arg4[%c0_7] : memref<1xf32, #tpu.memory_space<smem>>
    %14 = vector.broadcast %13 : f32 to vector<8x1xf32>
    %15 = arith.addf %12, %14 : vector<8x1xf32>
    %cst_8 = arith.constant 0.000000e+00 : f32
    %16 = vector.broadcast %cst_8 : f32 to vector<8x1xf32>
    %17 = arith.subf %16, %15 : vector<8x1xf32>
    %18 = math.exp %17 : vector<8x1xf32>
    %cst_9 = arith.constant 1.000000e+00 : f32
    %19 = vector.broadcast %cst_9 : f32 to vector<8x1xf32>
    %20 = arith.addf %19, %18 : vector<8x1xf32>
    %21 = tpu.reciprocal %20 : vector<8x1xf32> -> vector<8x1xf32>
    %22 = arith.subf %0, %1 : vector<8x768xf32>
    %23 = vector.broadcast %21 : vector<8x1xf32> to vector<8x768xf32>
    %24 = arith.mulf %23, %22 : vector<8x768xf32>
    %25 = arith.addf %1, %24 : vector<8x768xf32>
    %c0_10 = arith.constant 0 : index
    %c0_11 = arith.constant 0 : index
    %26 = vector.load %arg5[%c0_10, %c0_11] : memref<8x768xf32, #tpu.memory_space<vmem>>, vector<8x768xf32>
    tpu.vector_store %arg5[%c0_10, %c0_11], %25 {strides = array<i32>} : memref<8x768xf32, #tpu.memory_space<vmem>>, vector<8x768xf32>,
    return
  }
  func.func @transform_0(%arg0: i32) -> (i32, i32) {
    %c0_i32 = arith.constant 0 : i32
    %c0_i32_0 = arith.constant 0 : i32
    return %arg0, %c0_i32 : i32, i32
  }
  func.func @transform_1(%arg0: i32) -> (i32, i32) {
    %c0_i32 = arith.constant 0 : i32
    %c0_i32_0 = arith.constant 0 : i32
    return %arg0, %c0_i32 : i32, i32
  }
  func.func @transform_2(%arg0: i32) -> (i32, i32) {
    %c0_i32 = arith.constant 0 : i32
    %c0_i32_0 = arith.constant 0 : i32
    %c0_i32_1 = arith.constant 0 : i32
    return %c0_i32, %c0_i32_0 : i32, i32
  }
  func.func @transform_3(%arg0: i32) -> i32 {
    %c0_i32 = arith.constant 0 : i32
    %c0_i32_0 = arith.constant 0 : i32
    return %c0_i32 : i32
  }
  func.func @transform_4(%arg0: i32) -> (i32, i32) {
    %c0_i32 = arith.constant 0 : i32
    %c0_i32_0 = arith.constant 0 : i32
    return %arg0, %c0_i32 : i32, i32
  }
}

</mosaic_0001>

<bundles_post_ra>
// kernel: tpu_custom_call.1
= control target key start
LH: loop header
LB: loop body
LE: loop exit
PB: predicated region body
PF: predicated region fallthrough
CT: control target
= control target key end

     0   :  { %10 = vsyncpa [#allocation4], 0  ;;  %s418_s0 = inlined_call_operand.hbm [shape: f32[8,768], index: 0, kind: input, shape index: {}]   ;;  %s419_s1 = inlined_call_operand.hbm [shape: f32[8,768], index: 1, kind: input, shape index: {}]   ;;  %s420_s2 = inlined_call_operand.hbm [shape: f32[1,1536], index: 2, kind: input, shape index: {}]   ;;  %s421_s3 = inlined_call_operand.<no memory space> [shape: f32[1], index: 3, kind: input, shape index: {}]   ;;  %s422_s4 = inlined_call_operand.hbm [shape: f32[8,768], index: 4, kind: output, shape index: {}]  }
   0x1   :  { %11 = vsyncpa [#allocation7], 0 }
   0x2   :  { %12 = vsyncpa [#allocation5], 0  ;;  %s307_s15 = smov [#allocation6]   ;;  %s308_s17 = smov [#allocation3]  }
   0x3   :  { %s29_s16 = sshll.u32 %s307_s15, 4  ;;  %s19_s18 = sshll.u32 %s308_s17, 4  ;;  %s30_s16 = int_to_ptr.vmem [resolvable:$true] %s29_s16  ;;  %s20_s18 = int_to_ptr.vmem [resolvable:$true] %s19_s18 }
   0x4   :  { %s213_s21 = scalar_lea.hbm %s419_s1, 768 }
   0x5   :  { %p214_p0 = scmp.ne.s32.totalorder %s419_s1, %s213_s21  ;;  %p217_p1 = scmp.lt.u32.totalorder %s213_s21, %s419_s1 }
   0x7   :  { %p219_p2 = pnand %p217_p1, %p214_p0 }
   0x9   :  { %222 = shalt.err (!%p219_p2)
}
   0xa   :  { %s223_s26 = scalar_lea.vmem %s30_s16, 768  ;;  %p228_p4 = scmp.lt.s32.totalorder %s30_s16, %s30_s16 }
   0xb   :  { %p224_p3 = scmp.ne.s32.totalorder %s30_s16, %s223_s26  ;;  %p229_p5 = scmp.lt.s32.totalorder %s223_s26, %s223_s26 }
   0xd   :  { %p230_p6 = por %p229_p5, %p228_p4 }
   0xf   :  { %p231_p7 = pnand %p230_p6, %p224_p3 }
  0x11   :  { %234 = shalt.err (!%p231_p7)
}
  0x12   :  { %32 = dma.hbm_to_vmem [thread:$0]  %s419_s1, 768, %s30_s16, [#allocation7]  }
  0x13   :  { %s235_s5 = scalar_lea.hbm %s418_s0, 768 }
  0x14   :  { %p236_p8 = scmp.ne.s32.totalorder %s418_s0, %s235_s5  ;;  %p239_p9 = scmp.lt.u32.totalorder %s235_s5, %s418_s0 }
  0x16   :  { %p241_p10 = pnand %p239_p9, %p236_p8 }
  0x18   :  { %244 = shalt.err (!%p241_p10)
}
  0x19   :  { %s245_s10 = scalar_lea.vmem %s20_s18, 768  ;;  %p250_p12 = scmp.lt.s32.totalorder %s20_s18, %s20_s18 }
  0x1a   :  { %p246_p11 = scmp.ne.s32.totalorder %s20_s18, %s245_s10  ;;  %p251_p13 = scmp.lt.s32.totalorder %s245_s10, %s245_s10 }
  0x1c   :  { %p252_p0 = por %p251_p13, %p250_p12 }
  0x1e   :  { %p253_p1 = pnand %p252_p0, %p246_p11 }
  0x20   :  { %256 = shalt.err (!%p253_p1)
}
  0x21   :  { %22 = dma.hbm_to_vmem [thread:$0]  %s418_s0, 768, %s20_s18, [#allocation4]  }
  0x22   :  { %s309_s12 = smov [#allocation8]   ;;  %s257_s16 = scalar_lea.hbm %s420_s2, 192 }
  0x23   :  { %s39_s13 = sshll.u32 %s309_s12, 4  ;;  %p258_p2 = scmp.ne.s32.totalorder %s420_s2, %s257_s16  ;;  %s40_s13 = int_to_ptr.vmem [resolvable:$true] %s39_s13 }
  0x24   :  { %p261_p3 = scmp.lt.u32.totalorder %s257_s16, %s420_s2 }
  0x26   :  { %p263_p4 = pnand %p261_p3, %p258_p2 }
  0x28   :  { %266 = shalt.err (!%p263_p4)
}
  0x29   :  { %s267_s22 = scalar_lea.vmem %s40_s13, 192  ;;  %p272_p6 = scmp.lt.s32.totalorder %s40_s13, %s40_s13 }
  0x2a   :  { %p268_p5 = scmp.ne.s32.totalorder %s40_s13, %s267_s22  ;;  %p273_p7 = scmp.lt.s32.totalorder %s267_s22, %s267_s22 }
  0x2c   :  { %p274_p8 = por %p273_p7, %p272_p6 }
  0x2e   :  { %p275_p9 = pnand %p274_p8, %p268_p5 }
  0x30   :  { %278 = shalt.err (!%p275_p9)
}
  0x31   :  { %42 = dma.hbm_to_vmem [thread:$0]  %s420_s2, 192, %s40_s13, [#allocation7]  }
  0x32   :  { %301 = dma.done.wait [#allocation4], 768  }
  0x33   :  { %302 = vsyncadd [#allocation4], 4294966528 }
  0x34   :  { %303 = dma.done.wait [#allocation7], 960  }
  0x35   :  { %304 = vsyncadd [#allocation7], 4294966336  ;;  %v69_v0 = vlaneseq  ;;  %v372_v6 = vld [vmem:[#allocation3] sm:$0xff]  ;;  %v374_v7 = vld [vmem:[#allocation3 + $0x8] sm:$0xff]  ;;  %v158_v57 = vstv %s421_s3  ;;  %s310_s3 = smov [#allocation9]  }
  0x36   :  { %v376_v9 = vld [vmem:[#allocation3 + $0x10] sm:$0xff]  ;;  %v66_v10 = vld [vmem:[#allocation8] sm:$0x3f]  ;;  %v67_v12 = vld [vmem:[#allocation8 + $0x6] sm:$0x3f]  ;;  %s195_s24 = sshll.u32 %s310_s3, 4  ;;  %s196_s24 = int_to_ptr.vmem [resolvable:$true] %s195_s24 }
  0x37   :  { %v70_v1 = vshrl.u32 %v69_v0, 7  ;;  %v378_v17 = vld [vmem:[#allocation3 + $0x18] sm:$0xff]  ;;  %v380_v18 = vld [vmem:[#allocation6] sm:$0xff]  ;;  %v384_v22 = vld [vmem:[#allocation6 + $0x10] sm:$0xff]  ;;  %s279_s25 = scalar_lea.vmem %s196_s24, 768  ;;  %p284_p11 = scmp.lt.s32.totalorder %s196_s24, %s196_s24 }
  0x38   :  { %v382_v21 = vld [vmem:[#allocation6 + $0x8] sm:$0xff]  ;;  %v58_v27 = vld [vmem:[#allocation3 + $0x20] sm:$0xff]  ;;  %v63_v30 = vld [vmem:[#allocation6 + $0x18] sm:$0xff]  ;;  %p280_p10 = scmp.ne.s32.totalorder %s196_s24, %s279_s25  ;;  %p285_p12 = scmp.lt.s32.totalorder %s279_s25, %s279_s25 }
  0x39   :  { %v71_v2 = vsub.s32 0, %v70_v1  ;;  %v75_v3 = vsub.s32 1, %v70_v1  ;;  %v79_v4 = vsub.s32 2, %v70_v1  ;;  %v83_v5 = vsub.s32 3, %v70_v1  ;;  %v59_v35 = vld [vmem:[#allocation3 + $0x28] sm:$0xff]  ;;  %v64_v39 = vld [vmem:[#allocation6 + $0x20] sm:$0xff] }
  0x3a   :  { %v87_v8 = vsub.s32 4, %v70_v1  ;;  %v91_v11 = vsub.s32 5, %v70_v1  ;;  %v65_v45 = vld [vmem:[#allocation6 + $0x28] sm:$0xff]  ;;  %v165_v1 = vsub.f32 %v372_v6, %v380_v18  ;;  %p286_p13 = por %p285_p12, %p284_p11 }
  0x3b   :  { %v72_v13 = vrot.slane %v66_v10, %v71_v2  ;;  %v76_v14 = vrot.slane %v66_v10, %v75_v3  ;;  %v80_v15 = vrot.slane %v66_v10, %v79_v4  ;;  %v84_v16 = vrot.slane %v66_v10, %v83_v5 }
  0x3c   :  { %v116_v19 = vrot.slane %v67_v12, %v71_v2  ;;  %v120_v20 = vrot.slane %v67_v12, %v75_v3  ;;  %v88_v23 = vrot.slane %v66_v10, %v87_v8  ;;  %v124_v28 = vrot.slane %v67_v12, %v79_v4  ;;  %p287_p0 = pnand %p286_p13, %p280_p10 }
  0x3d   :  { %v99_v24 = vmul.f32 %v72_v13, %v372_v6  ;;  %v100_v25 = vmul.f32 %v76_v14, %v374_v7  ;;  %v101_v26 = vmul.f32 %v80_v15, %v376_v9  ;;  %v128_v29 = vrot.slane %v67_v12, %v83_v5 }
  0x3e   :  { %v92_v31 = vrot.slane %v66_v10, %v91_v11  ;;  %v102_v32 = vmul.f32 %v84_v16, %v378_v17  ;;  %v143_v34 = vmul.f32 %v116_v19, %v380_v18  ;;  %v132_v36 = vrot.slane %v67_v12, %v87_v8 }
  0x3f   :  { %v105_v33 = vadd.f32 %v100_v25, %v99_v24  ;;  %v144_v37 = vmul.f32 %v120_v20, %v382_v21  ;;  %v145_v38 = vmul.f32 %v124_v28, %v384_v22  ;;  %v103_v40 = vmul.f32 %v88_v23, %v58_v27 }
  0x40   :  { %v136_v42 = vrot.slane %v67_v12, %v91_v11  ;;  %v146_v43 = vmul.f32 %v128_v29, %v63_v30  ;;  %v104_v46 = vmul.f32 %v92_v31, %v59_v35  ;;  %v147_v48 = vmul.f32 %v132_v36, %v64_v39 }
  0x41   :  { %v106_v41 = vadd.f32 %v105_v33, %v101_v26  ;;  %v149_v44 = vadd.f32 %v144_v37, %v143_v34  ;;  %v166_v2 = vsub.f32 %v374_v7, %v382_v21  ;;  %v167_v3 = vsub.f32 %v376_v9, %v384_v22 }
  0x42   :  { %v148_v51 = vmul.f32 %v136_v42, %v65_v45  ;;  %v168_v4 = vsub.f32 %v378_v17, %v63_v30  ;;  %v169_v5 = vsub.f32 %v58_v27, %v64_v39  ;;  %v170_v8 = vsub.f32 %v59_v35, %v65_v45 }
  0x43   :  { %v107_v47 = vadd.f32 %v106_v41, %v102_v32  ;;  %v150_v49 = vadd.f32 %v149_v44, %v145_v38 }
  0x45   :  { %v108_v50 = vadd.f32 %v107_v47, %v103_v40  ;;  %v151_v52 = vadd.f32 %v150_v49, %v146_v43 }
  0x47   :  { %v109_v53 = vadd.f32 %v108_v50, %v104_v46  ;;  %v152_v54 = vadd.f32 %v151_v52, %v147_v48 }
  0x49   :  { %110 = vadd.xlane.f32.xlu0 %v109_v53  ;;  %v153_v55 = vadd.f32 %v152_v54, %v148_v51 }
  0x4d   :  { %154 = vadd.xlane.f32.xlu0 %v153_v55 }
  0xd6   :  { %v111_v56 = vpop.xlane.xlu0 %110 }
  0xda   :  { %v155_v58 = vpop.xlane.xlu0 %154 }
  0xdb   :  { %v156_v59 = vadd.f32 %v155_v58, %v111_v56 }
  0xdd   :  { %v159_v60 = vadd.f32 %v158_v57, %v156_v59 }
  0xdf   :  { %v160_v61 = vsub.f32 0.0, %v159_v60 }
  0xe1   :  { %v161_v62 = vmul.f32 1.442695, %v160_v61 }
  0xe3   :  { %209 = vpow2.f32 %v161_v62 }
  0xed   :  { %v210_v63 = vpop.eup %209 }
  0xee   :  { %v163_v0 = vadd.f32 1.0, %v210_v63 }
  0xf0   :  { %211 = vrcp.f32 %v163_v0 }
  0xfa   :  { %v212_v10 = vpop.eup %211 }
  0xfb   :  { %v171_v11 = vmul.f32 %v212_v10, %v165_v1  ;;  %v172_v12 = vmul.f32 %v212_v10, %v166_v2  ;;  %v173_v13 = vmul.f32 %v212_v10, %v167_v3  ;;  %v174_v14 = vmul.f32 %v212_v10, %v168_v4 }
  0xfc   :  { %v175_v15 = vmul.f32 %v212_v10, %v169_v5  ;;  %v176_v16 = vmul.f32 %v212_v10, %v170_v8 }
  0xfd   :  { %v177_v6 = vadd.f32 %v171_v11, %v380_v18  ;;  %v178_v7 = vadd.f32 %v172_v12, %v382_v21  ;;  %v179_v19 = vadd.f32 %v173_v13, %v384_v22  ;;  %v180_v9 = vadd.f32 %v174_v14, %v63_v30 }
  0xfe   :  { %v181_v20 = vadd.f32 %v175_v15, %v64_v39  ;;  %v182_v17 = vadd.f32 %v176_v16, %v65_v45 }
  0xff   :  { %183 = vst [vmem:[#allocation9] sm:$0xff] %v177_v6  ;;  %184 = vst [vmem:[#allocation9 + $0x8] sm:$0xff] %v178_v7 }
 0x100   :  { %185 = vst [vmem:[#allocation9 + $0x10] sm:$0xff] %v179_v19  ;;  %186 = vst [vmem:[#allocation9 + $0x18] sm:$0xff] %v180_v9 }
 0x101   :  { %187 = vst [vmem:[#allocation9 + $0x20] sm:$0xff] %v181_v20  ;;  %188 = vst [vmem:[#allocation9 + $0x28] sm:$0xff] %v182_v17 }
 0x102   :  { %290 = shalt.err (!%p287_p0)
}
 0x103   :  { %s291_s28 = scalar_lea.hbm %s422_s4, 768 }
 0x104   :  { %p292_p1 = scmp.ne.s32.totalorder %s422_s4, %s291_s28  ;;  %p295_p2 = scmp.lt.u32.totalorder %s291_s28, %s422_s4 }
 0x106   :  { %p297_p3 = pnand %p295_p2, %p292_p1 }
 0x108   :  { %300 = shalt.err (!%p297_p3)
}
 0x109   :  { %198 = dma.vmem_to_hbm [thread:$0]  %s196_s24, 768, %s422_s4, [#allocation5]  }
 0x10a   :  { %305 = dma.done.wait [#allocation5], 768  }
 0x10b   :  { %306 = vsyncadd [#allocation5], 4294966528 }
 0x10c   :  { %202 = vsyncpa [#allocation4], 1 }
 0x10d   :  { %203 = vsyncpa [#allocation7], 1 }
 0x10e   :  { %204 = vsyncpa [#allocation5], 1 }

</bundles_post_ra>
